<compile_context>
chip_gen: v5e
topology: v5e:2x2
jax: 0.10.0
libtpu: 0.0.40
codegen_flags: <defaults>
</compile_context>

<pallas_src>
import functools

import jax
import jax.numpy as jnp
from jax.experimental import pallas as pl
from jax.experimental.pallas import tpu as pltpu


def _pcb_fuse_kernel(w_ref, x_ref, fused_ref, *, slice_width, period):
    # w_ref: SMEM (3,) f32 fuse weights (w1, w2, w3).
    # x_ref / fused_ref: VMEM (blk_rows, trailing) blocks, lane-dense trailing.
    pos = jax.lax.broadcasted_iota(jnp.int32, fused_ref.shape, 1)
    if period != fused_ref.shape[1]:
        pos = pos % period  # scale pattern repeats every H*W positions
    # H rows 0:4 -> w1, 4:8 -> w2, 8: -> w3  (flattened row-major over (H, W))
    scale = jnp.where(
        pos < 4 * slice_width,
        w_ref[0],
        jnp.where(pos < 8 * slice_width, w_ref[1], w_ref[2]),
    )
    x = x_ref[...]
    fused_ref[...] = (x * scale.astype(x.dtype)).astype(fused_ref.dtype)


def _round_up(x, m):
    return ((x + m - 1) // m) * m


def _choose_flatten(N, C, H, W):
    """Pick a lane-dense flatten (rows, trailing); scale period is always H*W."""
    hw = H * W
    if hw % 128 == 0:
        return N * C, hw
    chw = C * hw
    if chw % 128 == 0:
        return N, chw
    # Fallback: correct but trailing dim not a multiple of 128 -> masked
    # partial stores.  TODO(synk): pad W at the model level for such shapes.
    return N * C, hw


def _pick_block_rows(rows, trailing, itemsize, target_bytes=4 << 20):
    align = max(8, 32 // itemsize)  # 8 rows (f32), 16 (bf16), 32 (int8)
    row_bytes = trailing * itemsize
    blk = max(align, (target_bytes // row_bytes) // align * align)
    # Guarantee >= 2 grid steps on non-tiny inputs so the "parallel" axis can
    # shard across both v7x TensorCores.
    blk = min(blk, _round_up((rows + 1) // 2, align))
    blk = min(blk, _round_up(rows, align))
    return max(align, blk)


def pcb_fuse(x, fuse_weights, compute_fused=True):
    """PCB slice-weighted fusion.

    Faithful PyTorch forward: returns x unchanged (the weighted slices are
    computed and discarded), so `y` costs nothing.  With compute_fused=True
    the expressed compute (w1/w2/w3 on H slices 0:4 / 4:8 / 8:) is also
    returned from a Pallas kernel as an auxiliary array.
    """
    N, C, H, W = x.shape
    assert H >= 8, "PCB slicing needs H >= 8"
    fuse_weights = jnp.asarray(fuse_weights, jnp.float32)

    if not compute_fused:
        # Reference forward discards the weighted parts entirely.
        return x, None

    hw = H * W
    rows, trailing = _choose_flatten(N, C, H, W)
    x2 = x.reshape(rows, trailing)  # free view of contiguous NCHW

    itemsize = jnp.dtype(x.dtype).itemsize
    blk_rows = _pick_block_rows(rows, trailing, itemsize)
    grid = (pl.cdiv(rows, blk_rows),)

    blk_bytes = blk_rows * trailing * itemsize
    # x + fused, each double-buffered, plus slack; capped below v7x's budget
    # and explicitly above v5e's 16 MiB default scoped limit when needed.
    vmem_limit = int(min(4 * blk_bytes + (4 << 20), 24 << 20))

    kernel = functools.partial(_pcb_fuse_kernel, slice_width=W, period=hw)

    cost = pl.CostEstimate(
        flops=rows * trailing,
        transcendentals=0,
        bytes_accessed=2 * rows * trailing * itemsize + 3 * 4,
    )

    fused2 = pl.pallas_call(
        kernel,
        grid=grid,
        in_specs=[
            pl.BlockSpec(memory_space=pltpu.MemorySpace.SMEM),  # (3,) weights
            pl.BlockSpec((blk_rows, trailing), lambda i: (i, 0)),
        ],
        out_specs=pl.BlockSpec((blk_rows, trailing), lambda i: (i, 0)),
        out_shape=jax.ShapeDtypeStruct((rows, trailing), x.dtype),
        compiler_params=pltpu.CompilerParams(
            dimension_semantics=("parallel",),
            vmem_limit_bytes=vmem_limit,
        ),
        cost_estimate=cost,
    )(fuse_weights, x2)

    return x, fused2.reshape(N, C, H, W)


if __name__ == "__main__":
    key = jax.random.PRNGKey(0)
    N, C, H, W = 2, 4, 16, 16
    x = jax.random.normal(key, (N, C, H, W), dtype=jnp.float32)

    # Deterministic parameter init, matching nn.Parameter(...).fill_(0.33)
    fuse_weights = jnp.array([0.33, 0.33, 0.33], dtype=jnp.float32)

    # Faithful forward path: zero kernel work, x returned as-is.
    y_only, none_fused = pcb_fuse(x, fuse_weights, compute_fused=False)
    assert y_only is x and none_fused is None

    # Exercise the Pallas kernel via the auxiliary output.
    y, fused = pcb_fuse(x, fuse_weights, compute_fused=True)
    y = jax.block_until_ready(y)
    fused = jax.block_until_ready(fused)

    # Forward semantics: output is the untouched input.
    assert jnp.allclose(y, x), "PcbFuse forward must return x_input unchanged"

    # Check the in-kernel weighted-slice compute against a pure-JAX reference.
    ref_fused = jnp.concatenate(
        [
            x[:, :, 0:4, :] * fuse_weights[0],
            x[:, :, 4:8, :] * fuse_weights[1],
            x[:, :, 8:, :] * fuse_weights[2],
        ],
        axis=2,
    )
    assert jnp.allclose(fused, ref_fused, atol=1e-6)

    print("KERNEL_OK")
</pallas_src>

<mosaic_0001>
module attributes {stable_mosaic.version = 11 : i64} {
  func.func @_pcb_fuse_kernel(%arg0: i32, %arg1: memref<3xf32, #tpu.memory_space<smem>>, %arg2: memref<8x256xf32, #tpu.memory_space<vmem>>, %arg3: memref<8x256xf32, #tpu.memory_space<vmem>>) attributes {dimension_semantics = [#tpu.dimension_semantics<parallel>], iteration_bounds = array<i64: 1>, scalar_prefetch = 0 : i64, scratch_operands = 0 : i64, tpu.core_type = #tpu.core_type<tc>, window_params = [{transform_indices = @transform_0, window_bounds = array<i64: 3>}, {transform_indices = @transform_1, window_bounds = array<i64: 8, 256>}, {transform_indices = @transform_2, window_bounds = array<i64: 8, 256>}]} {
    %0 = tpu.iota {dimensions = array<i32: 1>} : vector<8x256xi32>
    %c64_i32 = arith.constant 64 : i32
    %1 = vector.broadcast %c64_i32 : i32 to vector<8x256xi32>
    %2 = arith.cmpi slt, %0, %1 : vector<8x256xi32>
    %c0 = arith.constant 0 : index
    %3 = memref.load %arg1[%c0] : memref<3xf32, #tpu.memory_space<smem>>
    %c128_i32 = arith.constant 128 : i32
    %4 = vector.broadcast %c128_i32 : i32 to vector<8x256xi32>
    %5 = arith.cmpi slt, %0, %4 : vector<8x256xi32>
    %c1 = arith.constant 1 : index
    %6 = memref.load %arg1[%c1] : memref<3xf32, #tpu.memory_space<smem>>
    %c2 = arith.constant 2 : index
    %7 = memref.load %arg1[%c2] : memref<3xf32, #tpu.memory_space<smem>>
    %8 = vector.broadcast %6 : f32 to vector<8x256xf32>
    %9 = vector.broadcast %7 : f32 to vector<8x256xf32>
    %10 = arith.select %5, %8, %9 : vector<8x256xi1>, vector<8x256xf32>
    %11 = vector.broadcast %3 : f32 to vector<8x256xf32>
    %12 = arith.select %2, %11, %10 : vector<8x256xi1>, vector<8x256xf32>
    %c0_0 = arith.constant 0 : index
    %c0_1 = arith.constant 0 : index
    %13 = vector.load %arg2[%c0_0, %c0_1] : memref<8x256xf32, #tpu.memory_space<vmem>>, vector<8x256xf32>
    %14 = arith.mulf %13, %12 : vector<8x256xf32>
    %c0_2 = arith.constant 0 : index
    %c0_3 = arith.constant 0 : index
    %15 = vector.load %arg3[%c0_2, %c0_3] : memref<8x256xf32, #tpu.memory_space<vmem>>, vector<8x256xf32>
    tpu.vector_store %arg3[%c0_2, %c0_3], %14 {strides = array<i32>} : memref<8x256xf32, #tpu.memory_space<vmem>>, vector<8x256xf32>,
    return
  }
  func.func @transform_0(%arg0: i32) -> i32 {
    %c0_i32 = arith.constant 0 : i32
    %c0_i32_0 = arith.constant 0 : i32
    return %c0_i32 : i32
  }
  func.func @transform_1(%arg0: i32) -> (i32, i32) {
    %c0_i32 = arith.constant 0 : i32
    %c0_i32_0 = arith.constant 0 : i32
    return %arg0, %c0_i32 : i32, i32
  }
  func.func @transform_2(%arg0: i32) -> (i32, i32) {
    %c0_i32 = arith.constant 0 : i32
    %c0_i32_0 = arith.constant 0 : i32
    return %arg0, %c0_i32 : i32, i32
  }
}

</mosaic_0001>

<bundles_post_ra>
// kernel: tpu_custom_call.1
= control target key start
LH: loop header
LB: loop body
LE: loop exit
PB: predicated region body
PF: predicated region fallthrough
CT: control target
= control target key end

     0   :  { %7 = vsyncpa [#allocation5], 0  ;;  %s178_s0 = inlined_call_operand.hbm [shape: f32[3], index: 0, kind: input, shape index: {}]   ;;  %s179_s1 = inlined_call_operand.hbm [shape: f32[8,256], index: 1, kind: input, shape index: {}]   ;;  %s180_s2 = inlined_call_operand.hbm [shape: f32[8,256], index: 2, kind: output, shape index: {}]  }
   0x1   :  { %8 = vsyncpa [#allocation3], 0 }
   0x2   :  { %9 = vsyncpa [#allocation4], 0  ;;  %s15_s11 = sshll.u32 %s178_s0, 4  ;;  %s24_s14 = sshll.u32 %s179_s1, 4  ;;  %s16_s11 = int_to_ptr.hbm [resolvable:$true] %s15_s11  ;;  %s25_s14 = int_to_ptr.hbm [resolvable:$true] %s24_s14 }
   0x3   :  { %s151_s15 = smov [#allocation2]   ;;  %s152_s16 = smov [#allocation6]  }
   0x4   :  { %18 = dma.hbm_to_smem %s16_s11, 16, %s151_s15, [#allocation5]  }
   0x5   :  { %s26_s17 = sshll.u32 %s152_s16, 4  ;;  %s27_s17 = int_to_ptr.vmem [resolvable:$true] %s26_s17 }
   0x6   :  { %29 = dma.hbm_to_vmem [thread:$0]  %s25_s14, 256, %s27_s17, [#allocation3]  }
   0x7   :  { %145 = dma.done.wait [#allocation5], 16  }
   0x8   :  { %146 = vsyncadd [#allocation5], 4294967280 }
   0x9   :  { %147 = dma.done.wait [#allocation3], 256  }
   0xa   :  { %148 = vsyncadd [#allocation3], 4294967040 }
   0xb   :  { %38 = sfence }
   0xc   :  { %v39_v0 = vlaneseq  ;;  %s44_s18 = sld [smem:[#allocation2]]  ;;  %v56_v3 = vld [vmem:[#allocation6] sm:$0xff]  ;;  %v57_v4 = vld [vmem:[#allocation6 + $0x8] sm:$0xff]  ;;  %s153_s1 = smov [#allocation7]  }
   0xd   :  { %s80_s0 = sld [smem:[#allocation2 + $0x1]]  ;;  %s67_s20 = sshll.u32 %s153_s1, 4  ;;  %s68_s20 = int_to_ptr.vmem [resolvable:$true] %s67_s20 }
   0xe   :  { %v40_v1 = vand.u32 127, %v39_v0  ;;  %s81_s19 = sld [smem:[#allocation2 + $0x2]]  ;;  %s69_s23 = sshll.u32 %s180_s2, 4  ;;  %s70_s23 = int_to_ptr.hbm [resolvable:$true] %s69_s23 }
  0x10   :  { %vm42_vm0 = vcmp.lt.s32.totalorder %v40_v1, 64 }
  0x12   :  { %v53_v2 = vstv %s44_s18 }
  0x13   :  { %v49_v5 = vstv %s80_s0 }
  0x14   :  { %v54_v6 = vsel %vm42_vm0, %v53_v2, %v49_v5  ;;  %v50_v7 = vstv %s81_s19 }
  0x15   :  { %v58_v8 = vmul.f32 %v56_v3, %v54_v6  ;;  %v59_v9 = vmul.f32 %v57_v4, %v50_v7 }
  0x17   :  { %60 = vst [vmem:[#allocation7] sm:$0xff] %v58_v8 }
  0x18   :  { %61 = vst [vmem:[#allocation7 + $0x8] sm:$0xff] %v59_v9 }
  0x19   :  { %72 = dma.vmem_to_hbm [thread:$0]  %s68_s20, 256, %s70_s23, [#allocation4]  }
  0x1a   :  { %149 = dma.done.wait [#allocation4], 256  }
  0x1b   :  { %150 = vsyncadd [#allocation4], 4294967040 }
  0x1c   :  { %77 = vsyncpa [#allocation3], 1 }
  0x1d   :  { %78 = vsyncpa [#allocation4], 1 }
  0x1e   :  { %79 = vsyncpa [#allocation5], 1 }

</bundles_post_ra>
